<compile_context>
chip_gen: v7x
topology: tpu7x:2x2x1
jax: 0.10.0
libtpu: 0.0.40
codegen_flags: <defaults>
</compile_context>

<pallas_src>
import functools

import jax
import jax.numpy as jnp
from jax.experimental import pallas as pl
from jax.experimental.pallas import tpu as pltpu


def _round_up(x, m):
    return ((x + m - 1) // m) * m


def _choose_tk(d_pad):
    # Largest convenient K tile that divides the padded feature dim.  512-wide
    # bf16 weight tiles are 512*N_pad*2 bytes per buffer (double-buffered),
    # comfortably inside v7x's 64 MiB per-TC VMEM even for N_pad ~ 1024.
    for tk in (512, 256, 128):
        if d_pad % tk == 0:
            return tk
    return d_pad  # d_pad is already a multiple of 128


def _matmul_bias_kernel(x_ref, w_ref, b_ref, o_ref, acc_ref):
    # x_ref:   (B_tile, tk)     bf16  activation tile
    # w_ref:   (tk, N_pad)      bf16  folded-weight tile
    # b_ref:   (1, N_pad)       f32   folded bias (resident)
    # o_ref:   (B_tile, N_pad)  f32   logits tile
    # acc_ref: (B_tile, N_pad)  f32   VMEM accumulator scratch
    k = pl.program_id(1)

    @pl.when(k == 0)
    def _():
        acc_ref[...] = jnp.zeros_like(acc_ref)

    acc_ref[...] += jnp.dot(x_ref[...], w_ref[...],
                            preferred_element_type=jnp.float32)  # MXU, f32 acc

    @pl.when(k == pl.num_programs(1) - 1)
    def _():
        o_ref[...] = acc_ref[...] + b_ref[...]


@functools.partial(jax.jit, static_argnames=("b_tile", "tk"))
def _pallas_logits(x_pad, w_pad, b_pad, *, b_tile, tk):
    B_pad, D_pad = x_pad.shape
    N_pad = w_pad.shape[1]
    grid = (B_pad // b_tile, D_pad // tk)  # (batch tiles, K tiles) — K innermost
    return pl.pallas_call(
        _matmul_bias_kernel,
        out_shape=jax.ShapeDtypeStruct((B_pad, N_pad), jnp.float32),
        grid_spec=pltpu.PrefetchScalarGridSpec(
            num_scalar_prefetch=0,
            grid=grid,
            in_specs=[
                pl.BlockSpec((b_tile, tk), lambda b, k: (b, k)),   # x
                pl.BlockSpec((tk, N_pad), lambda b, k: (k, 0)),    # w (no b dep)
                pl.BlockSpec((1, N_pad), lambda b, k: (0, 0)),     # bias resident
            ],
            out_specs=pl.BlockSpec((b_tile, N_pad), lambda b, k: (b, 0)),
            scratch_shapes=[pltpu.VMEM((b_tile, N_pad), jnp.float32)],
        ),
        compiler_params=pltpu.CompilerParams(
            dimension_semantics=("parallel", "arbitrary"),
            vmem_limit_bytes=32 * 1024 * 1024,   # safe on v5e/v6e/v7x
        ),
    )(x_pad, w_pad, b_pad)


class GeneralPallasModel:
    """JAX/Pallas equivalent of GeneralTorchModel with a synthetic linear model."""

    def __init__(self, n_class=10, im_mean=None, im_std=None,
                 in_shape=(4, 16, 16), key=None):
        self.n_class = n_class
        self.im_mean = im_mean
        self.im_std = im_std
        self.num_queries = 0
        self.C, self.H, self.W = in_shape
        D = self.C * self.H * self.W
        self.D = D

        if key is None:
            key = jax.random.PRNGKey(0)
        kw, kb = jax.random.split(key)
        # Deterministic synthetic "model" parameters (linear classifier head),
        # kept in f32 as the reference/master copy.
        self.w = (jax.random.normal(kw, (D, n_class), dtype=jnp.float32)
                  * (1.0 / jnp.sqrt(D)))
        self.b = jax.random.normal(kb, (1, n_class), dtype=jnp.float32) * 0.01

        # --- Fold the per-channel normalization into the linear head --------
        # ((x - mean)/std) @ w + b == x @ (w * inv_std[:,None]) + (b - (mean*inv_std) @ w)
        if im_mean is not None and im_std is not None:
            m = jnp.asarray(im_mean, dtype=jnp.float32).reshape(self.C, 1, 1)
            s = jnp.asarray(im_std, dtype=jnp.float32).reshape(self.C, 1, 1)
            mean_flat = jnp.broadcast_to(m, (self.C, self.H, self.W)).reshape(D)
            inv_std_flat = jnp.broadcast_to(
                1.0 / s, (self.C, self.H, self.W)).reshape(D)
        else:
            mean_flat = jnp.zeros((D,), dtype=jnp.float32)
            inv_std_flat = jnp.ones((D,), dtype=jnp.float32)

        self.w_folded = self.w * inv_std_flat[:, None]
        self.b_folded = self.b - (mean_flat * inv_std_flat)[None, :] @ self.w

        # --- Pad to MXU/lane-friendly shapes, cast weights to bf16 ----------
        self.N_pad = _round_up(n_class, 128)       # lane-dense output
        self.D_pad = _round_up(D, 128)
        self.tk = _choose_tk(self.D_pad)

        w_pad = jnp.zeros((self.D_pad, self.N_pad), dtype=jnp.bfloat16)
        self.w_kernel = w_pad.at[:D, :n_class].set(
            self.w_folded.astype(jnp.bfloat16))
        b_pad = jnp.zeros((1, self.N_pad), dtype=jnp.float32)
        self.b_kernel = b_pad.at[:, :n_class].set(self.b_folded)

    def forward(self, image):
        image = jnp.asarray(image, dtype=jnp.float32)
        if image.ndim != 4:                      # mirrors image.unsqueeze(0)
            image = image[None, ...]
        B = image.shape[0]
        x_flat = image.reshape(B, -1)            # NCHW element order preserved

        b_tile = 128 if B >= 128 else _round_up(max(B, 1), 8)
        B_pad = _round_up(B, b_tile)
        x_pad = jnp.zeros((B_pad, self.D_pad), dtype=jnp.bfloat16)
        x_pad = x_pad.at[:B, :self.D].set(x_flat.astype(jnp.bfloat16))

        logits_pad = _pallas_logits(x_pad, self.w_kernel, self.b_kernel,
                                    b_tile=b_tile, tk=self.tk)
        return logits_pad[:B, :self.n_class]

    def predict_prob(self, image):
        logits = self.forward(image)
        self.num_queries += logits.shape[0]
        return logits

    def predict_label(self, image):
        logits = self.predict_prob(image)
        return jnp.argmax(logits, axis=1)


if __name__ == "__main__":
    key = jax.random.PRNGKey(0)
    k_img, k_model = jax.random.split(key)

    B, C, H, W = 2, 4, 16, 16
    image = jax.random.uniform(k_img, (B, C, H, W), dtype=jnp.float32)

    model = GeneralPallasModel(
        n_class=10,
        im_mean=[0.485, 0.456, 0.406, 0.5],
        im_std=[0.229, 0.224, 0.225, 0.25],
        in_shape=(C, H, W),
        key=k_model,
    )

    logits = model.forward(image)
    jax.block_until_ready(logits)
    assert logits.shape == (B, 10)

    # 1) Tight check against a bf16-consistent reference (same math the kernel
    #    does: bf16 inputs, f32 accumulation) — verifies the kernel exactly.
    x_flat = image.reshape(B, -1)
    x_bf = x_flat.astype(jnp.bfloat16)
    w_bf = model.w_folded.astype(jnp.bfloat16)
    ref_tight = jnp.dot(x_bf, w_bf,
                        preferred_element_type=jnp.float32) + model.b_folded
    assert jnp.allclose(logits, ref_tight, atol=1e-3, rtol=1e-3)

    # 2) Semantic check against the original f32 (x - mean)/std @ w + b path;
    #    looser tolerance accounts for the bf16 weight/activation cast.
    mean = jnp.asarray(model.im_mean, jnp.float32).reshape(1, C, 1, 1)
    std = jnp.asarray(model.im_std, jnp.float32).reshape(1, C, 1, 1)
    ref_sem = ((image - mean) / std).reshape(B, -1) @ model.w + model.b
    assert jnp.allclose(logits, ref_sem, atol=5e-2, rtol=5e-2)

    labels = model.predict_label(image)
    jax.block_until_ready(labels)

    print("KERNEL_OK")
</pallas_src>

<mosaic_0001>
module attributes {stable_mosaic.version = 11 : i64} {
  func.func @_matmul_bias_kernel(%arg0: i32, %arg1: i32, %arg2: memref<8x512xbf16, #tpu.memory_space<vmem>>, %arg3: memref<512x128xbf16, #tpu.memory_space<vmem>>, %arg4: memref<1x128xf32, #tpu.memory_space<vmem>>, %arg5: memref<8x128xf32, #tpu.memory_space<vmem>>, %arg6: memref<8x128xf32, #tpu.memory_space<vmem>>) attributes {dimension_semantics = [#tpu.dimension_semantics<parallel>, #tpu.dimension_semantics<arbitrary>], iteration_bounds = array<i64: 1, 2>, scalar_prefetch = 0 : i64, scratch_operands = 1 : i64, tpu.core_type = #tpu.core_type<tc>, window_params = [{transform_indices = @transform_0, window_bounds = array<i64: 8, 512>}, {transform_indices = @transform_1, window_bounds = array<i64: 512, 128>}, {pipeline_mode = #tpu.pipeline_mode<synchronous>, transform_indices = @transform_2, window_bounds = array<i64: 1, 128>}, {transform_indices = @transform_3, window_bounds = array<i64: 8, 128>}]} {
    %c0_i32 = arith.constant 0 : i32
    %0 = arith.cmpi eq, %arg1, %c0_i32 : i32
    %1 = arith.extui %0 : i1 to i32
    %c0_i32_0 = arith.constant 0 : i32
    %2 = arith.cmpi ne, %1, %c0_i32_0 : i32
    scf.if %2 {
      %cst_9 = arith.constant 0.000000e+00 : f32
      %12 = vector.broadcast %cst_9 : f32 to vector<8x128xf32>
      %c0_10 = arith.constant 0 : index
      %c0_11 = arith.constant 0 : index
      %13 = vector.load %arg6[%c0_10, %c0_11] : memref<8x128xf32, #tpu.memory_space<vmem>>, vector<8x128xf32>
      tpu.vector_store %arg6[%c0_10, %c0_11], %12 {strides = array<i32>} : memref<8x128xf32, #tpu.memory_space<vmem>>, vector<8x128xf32>,
    } else {
    }
    %c0 = arith.constant 0 : index
    %c0_1 = arith.constant 0 : index
    %3 = vector.load %arg6[%c0, %c0_1] : memref<8x128xf32, #tpu.memory_space<vmem>>, vector<8x128xf32>
    %c0_2 = arith.constant 0 : index
    %c0_3 = arith.constant 0 : index
    %4 = vector.load %arg2[%c0_2, %c0_3] : memref<8x512xbf16, #tpu.memory_space<vmem>>, vector<8x512xbf16>
    %c0_4 = arith.constant 0 : index
    %c0_5 = arith.constant 0 : index
    %5 = vector.load %arg3[%c0_4, %c0_5] : memref<512x128xbf16, #tpu.memory_space<vmem>>, vector<512x128xbf16>
    %cst = arith.constant dense<0.000000e+00> : vector<8x128xf32>
    %6 = tpu.matmul %4, %5, %cst {dimension_numbers = #tpu.dot_dimension_numbers<[1], [0], [0], [1], [0, 0, 1, 1], [], []>} : vector<8x512xbf16>, vector<512x128xbf16>, vector<8x128xf32> -> vector<8x128xf32>
    %7 = arith.addf %3, %6 : vector<8x128xf32>
    %c0_6 = arith.constant 0 : index
    %c0_7 = arith.constant 0 : index
    %8 = vector.load %arg6[%c0_6, %c0_7] : memref<8x128xf32, #tpu.memory_space<vmem>>, vector<8x128xf32>
    tpu.vector_store %arg6[%c0_6, %c0_7], %7 {strides = array<i32>} : memref<8x128xf32, #tpu.memory_space<vmem>>, vector<8x128xf32>,
    %c1_i32 = arith.constant 1 : i32
    %9 = arith.cmpi eq, %arg1, %c1_i32 : i32
    %10 = arith.extui %9 : i1 to i32
    %c0_i32_8 = arith.constant 0 : i32
    %11 = arith.cmpi ne, %10, %c0_i32_8 : i32
    scf.if %11 {
      %c0_9 = arith.constant 0 : index
      %c0_10 = arith.constant 0 : index
      %12 = vector.load %arg6[%c0_9, %c0_10] : memref<8x128xf32, #tpu.memory_space<vmem>>, vector<8x128xf32>
      %c0_11 = arith.constant 0 : index
      %c0_12 = arith.constant 0 : index
      %13 = vector.load %arg4[%c0_11, %c0_12] : memref<1x128xf32, #tpu.memory_space<vmem>>, vector<1x128xf32>
      %14 = vector.broadcast %13 : vector<1x128xf32> to vector<8x128xf32>
      %15 = arith.addf %12, %14 : vector<8x128xf32>
      %c0_13 = arith.constant 0 : index
      %c0_14 = arith.constant 0 : index
      %16 = vector.load %arg5[%c0_13, %c0_14] : memref<8x128xf32, #tpu.memory_space<vmem>>, vector<8x128xf32>
      tpu.vector_store %arg5[%c0_13, %c0_14], %15 {strides = array<i32>} : memref<8x128xf32, #tpu.memory_space<vmem>>, vector<8x128xf32>,
    } else {
    }
    return
  }
  func.func @transform_0(%arg0: i32, %arg1: i32) -> (i32, i32) {
    %c0_i32 = arith.constant 0 : i32
    return %arg0, %arg1 : i32, i32
  }
  func.func @transform_1(%arg0: i32, %arg1: i32) -> (i32, i32) {
    %c0_i32 = arith.constant 0 : i32
    %c0_i32_0 = arith.constant 0 : i32
    return %arg1, %c0_i32 : i32, i32
  }
  func.func @transform_2(%arg0: i32, %arg1: i32) -> (i32, i32) {
    %c0_i32 = arith.constant 0 : i32
    %c0_i32_0 = arith.constant 0 : i32
    %c0_i32_1 = arith.constant 0 : i32
    return %c0_i32, %c0_i32_0 : i32, i32
  }
  func.func @transform_3(%arg0: i32, %arg1: i32) -> (i32, i32) {
    %c0_i32 = arith.constant 0 : i32
    %c0_i32_0 = arith.constant 0 : i32
    return %arg0, %c0_i32 : i32, i32
  }
}

</mosaic_0001>

<bundles_post_ra>
// kernel: _pallas_logits.1
= control target key start
LH: loop header
LB: loop body
LE: loop exit
PB: predicated region body
PF: predicated region fallthrough
CT: control target
= control target key end

     0   :  { %8 = vsyncpa [#allocation4], 0  ;;  %s1330_s0 = inlined_call_operand.hbm [shape: bf16[8,1024], index: 0, kind: input, shape index: {}]   ;;  %s1331_s1 = inlined_call_operand.hbm [shape: bf16[1024,128], index: 1, kind: input, shape index: {}]   ;;  %s1332_s2 = inlined_call_operand.vmem [shape: f32[1,128], index: 2, kind: input, shape index: {}]   ;;  %s1333_s3 = inlined_call_operand.hbm [shape: f32[8,128], index: 3, kind: output, shape index: {}]  }
   0x1   :  { %10 = vsyncpa [#allocation4 + $0x1], 0 }
   0x2   :  { %11 = vsyncpa [#allocation7], 0 }
   0x3   :  { %13 = vsyncpa [#allocation7 + $0x1], 0 }
   0x4   :  { %14 = vsyncpa [#allocation5], 0  ;;  %s1088_s12 = smov 0   ;;  %s1090_s13 = smov 0  }
   0x5   :  { %s1092_s14 = smov 0   ;;  %s1094_s15 = smov 0  }
   0x6   :  { %s1096_s16 = smov 0   ;;  %s1098_s17 = smov 0  }
   0x7 LB: > { %s709_s18 = sadd.s32 4294967295, %s1060_s17   ;;  %s29_s19 = sadd.s32 1, %s1056_s16  ;;  %s1060_s17 = sphi %s1098_s17, %s20_s17   ;;  %s1056_s16 = sphi %s1096_s16, %s1347_s16   ;;  %s1052_s15 = sphi %s1094_s15, %s1346_s15   ;;  %s1048_s14 = sphi %s1092_s14, %s1345_s14   ;;  %s1044_s13 = sphi %s1090_s13, %s1344_s13   ;;  %s1040_s12 = sphi %s1088_s12, %s1343_s12  }
   0x8   : > { %p30_p0 = scmp.ge.s32.totalorder %s29_s19, 2  ;;  %s41_s20 = sadd.s32 1, %s1048_s14 }
   0x9   : > { %p48_p1 = scmp.ne.s32.totalorder %s1048_s14, %s1044_s13  ;;  %p49_p2 = scmp.eq.s32.totalorder %s1060_s17, 0 }
   0xa   : > { %s1349_s19 = smov (%p30_p0, %s29_s19), 0  ;;  %p54_p4 = scmp.ne.s32.totalorder %s1044_s13, %s1040_s12 }
   0xb   : > { %p1124_p3 = por %p49_p2, %p48_p1  ;;  %s37_s22 = ssub.s32 %s1056_s16, %s1349_s19 }
   0xc   : > { %p55_p5 = scmp.eq.s32.totalorder %s709_s18, 0  ;;  %p39_p6 = scmp.eq.s32.totalorder %s37_s22, 0 }
   0xd   : > { %p825_p8 = scmp.lt.s32.totalorder %s1060_s17, 2  ;;  %s1142_s25 = sand.u32 1, %s1048_s14  }
   0xe   : > { %p1133_p7 = por %p55_p5, %p54_p4  ;;  %s764_s26 = sshll.u32 %s1056_s16, 8 }
   0xf   : > { %s1139_s24 = scalar_select %p39_p6, %s1048_s14, %s41_s20  }
  0x10   : > { %s1336_s23 = scalar_select %p1133_p7, 1, 0 }
  0x11   : > { %s712_s27 = sshll.u32 %s1142_s25, 4  ;;  %s1149_s30 = scalar_lea.hbm %s1330_s0, %s764_s26 }
  0x12   : > { %s158_s4 = scalar_lea.vmem [#allocation3], %s712_s27  ;;  %p1153_p9 = pnand %p825_p8, %p1124_p3 }
  0x13   : > { %s168_s5 = sshll.u32 %s158_s4, 4  ;;  %s155_s7 = scalar_lea.sflag [#allocation4], %s1142_s25  ;;  %s1157_s5 = int_to_ptr.vmem [resolvable:$true] %s168_s5 }
  0x14   : > { %s916_s8 = scalar_lea.hbm %s1149_s30, 256  ;;  %p918_p13 = pneg %p1153_p9 }
  0x15   : > { %p917_p12 = scmp.ne.s32.totalorder %s1149_s30, %s916_s8  ;;  %s921_s11 = scalar_lea.hbm %s1330_s0, 512 }
  0x16   : > { %p922_p2 = scmp.lt.u32.totalorder %s1149_s30, %s1330_s0  ;;  %p923_p3 = scmp.lt.u32.totalorder %s921_s11, %s916_s8 }
  0x17   : > { %p919_p0 = pnand %p918_p13, %p917_p12  ;;  %p925_p5 = scmp.lt.u32.totalorder %s916_s8, %s1149_s30 }
  0x18   : > { %p924_p4 = por %p923_p3, %p922_p2 }
  0x19   : > { %p920_p1 = pneg %p919_p0 }
  0x1a   : > { %p926_p6 = por %p925_p5, %p924_p4 }
  0x1c   : > { %p927_p8 = pnand %p926_p6, %p920_p1 }
  0x1e   : > { %930 = shalt.err (!%p927_p8)
}
  0x1f   : > { %s931_s21 = scalar_lea.vmem %s1157_s5, 256  ;;  %s1062_s22 = smov [#allocation3]  }
  0x20   : > { %p932_p12 = scmp.ne.s32.totalorder %s1157_s5, %s931_s21  ;;  %s936_s26 = sshll.u32 %s1062_s22, 4  ;;  %s937_s26 = int_to_ptr.vmem [resolvable:$false] %s936_s26 }
  0x21   : > { %s938_s27 = scalar_lea.vmem %s937_s26, 512  ;;  %p939_p11 = scmp.lt.s32.totalorder %s1157_s5, %s937_s26 }
  0x22   : > { %p934_p0 = pnand %p932_p12, %p918_p13  ;;  %p940_p2 = scmp.lt.s32.totalorder %s938_s27, %s931_s21 }
  0x24   : > { %p935_p10 = pneg %p934_p0  ;;  %p941_p3 = por %p940_p2, %p939_p11 }
  0x26   : > { %p942_p4 = pnand %p941_p3, %p935_p10 }
  0x28   : > { %945 = shalt.err (!%p942_p4)
}
  0x29   : > { %821 = dma.hbm_to_vmem [thread:$0]  (!%p1153_p9), %s1149_s30, 256, %s1157_s5, %s155_s7  }
  0x2a   : > { %p1338_p1 = scmp.lt.s32.totalorder %s1060_s17, 3  ;;  %p1339_p5 = scmp.ge.s32.totalorder %s1060_s17, 1 }
  0x2b   : > { %s715_s29 = sshll.u32 %s1142_s25, 8  ;;  %s765_s4 = sshll.u32 %s1056_s16, 12 }
  0x2c   : > { %p1191_p6 = pnand %p1339_p5, %p1338_p1  ;;  %s1200_s10 = scalar_lea.hbm %s1331_s1, %s765_s4 }
  0x2d   : > { %s179_s11 = scalar_lea.vmem [#allocation6], %s715_s29  ;;  %s176_s30 = scalar_lea.sflag [#allocation7], %s1142_s25 }
  0x2e   : > { %s186_s12 = sshll.u32 %s179_s11, 4  ;;  %s946_s5 = scalar_lea.hbm %s1200_s10, 4096  ;;  %s1202_s12 = int_to_ptr.vmem [resolvable:$true] %s186_s12 }
  0x2f   : > { %p947_p10 = scmp.ne.s32.totalorder %s1200_s10, %s946_s5  ;;  %s951_s21 = scalar_lea.hbm %s1331_s1, 8192 }
  0x30   : > { %p952_p12 = scmp.lt.u32.totalorder %s1200_s10, %s1331_s1  ;;  %p953_p0 = scmp.lt.u32.totalorder %s951_s21, %s946_s5 }
  0x31   : > { %p949_p11 = pnand %p947_p10, %p918_p13  ;;  %p955_p3 = scmp.lt.u32.totalorder %s946_s5, %s1200_s10 }
  0x32   : > { %p954_p2 = por %p953_p0, %p952_p12 }
  0x33   : > { %p950_p8 = pneg %p949_p11 }
  0x34   : > { %p956_p4 = por %p955_p3, %p954_p2 }
  0x36   : > { %p957_p1 = pnand %p956_p4, %p950_p8 }
  0x38   : > { %960 = shalt.err (!%p957_p1)
}
  0x39   : > { %s961_s27 = scalar_lea.vmem %s1202_s12, 4096  ;;  %s1063_s29 = smov [#allocation6]  }
  0x3a   : > { %p962_p5 = scmp.ne.s32.totalorder %s1202_s12, %s961_s27  ;;  %s966_s4 = sshll.u32 %s1063_s29, 4  ;;  %s967_s4 = int_to_ptr.vmem [resolvable:$false] %s966_s4 }
  0x3b   : > { %s968_s8 = scalar_lea.vmem %s967_s4, 8192  ;;  %p969_p7 = scmp.lt.s32.totalorder %s1202_s12, %s967_s4 }
  0x3c   : > { %p964_p10 = pnand %p962_p5, %p918_p13  ;;  %p970_p12 = scmp.lt.s32.totalorder %s968_s8, %s961_s27 }
  0x3e   : > { %p965_p11 = pneg %p964_p10  ;;  %p971_p0 = por %p970_p12, %p969_p7 }
  0x40   : > { %p972_p2 = pnand %p971_p0, %p965_p11 }
  0x42   : > { %975 = shalt.err (!%p972_p2)
}
  0x43   : > { %s1064_s9 = smov 64   ;;  %s1065_s11 = smov 4  }
  0x44   : > { %824 = dma.hbm_to_vmem [thread:$0]  (!%p1153_p9), %s1200_s10, 4096, %s1202_s12, %s176_s30, %s1064_s9, %s1064_s9, %s1065_s11  }
  0x45   : > { %198 = sbr.rel (%p1191_p6) target bundleno = 379 (0x17b), region = 32  ;;  %s200_s5 = sand.u32 (!%p1191_p6), 1, %s1044_s13  }
  0x46   : > { %s719_s7 = sshll.u32 (!%p1191_p6), %s200_s5, 4  ;;  %s201_s20 = scalar_lea.sflag (!%p1191_p6), [#allocation4], %s200_s5 }
  0x47   : > { %s1233_s21 = scalar_lea.vmem (!%p1191_p6), [#allocation3], %s719_s7  ;;  %p1341_p7 = scmp.ne.s32.totalorder (!%p1191_p6), %s1336_s23, 0 }
  0x4c   : > { %1027 = dma.done.wait (%p1341_p7), %s201_s20, 256  }
  0x4d   : > { %1029 = vsyncadd (%p1341_p7), %s201_s20, 4294967040  ;;  %s720_s22 = sshll.u32 %s200_s5, 8  ;;  %s210_s6 = scalar_lea.sflag [#allocation7], %s200_s5 }
  0x4e   : > { %s1239_s25 = scalar_lea.vmem [#allocation6], %s720_s22 }
  0x4f   : > { %1031 = dma.done.wait (%p1341_p7), %s210_s6, 4096  }
  0x50   : > { %1033 = vsyncadd (%p1341_p7), %s210_s6, 4294963200  ;;  %p721_p9 = scmp.ne.s32.totalorder %s1052_s15, 0 }
  0x51   : > { %v1066_v0 = vmov (!%p721_p9), 0.0  }
  0x52   : > { %242 = sbr.rel (%p721_p9) target bundleno = 89 (0x59), region = 44  ;;  %243 = vst [vmem:[#allocation2] sm:$0xff] (!%p721_p9), %v1066_v0 }
  0x59 PF: > { %v880_v1 = vld [vmem:[%s1239_s25 + $0x40] sm:$0xff]   ;;  %v884_v5 = vld [vmem:[%s1239_s25 + $0x48] sm:$0xff]   ;;  %v888_v9 = vld [vmem:[%s1239_s25 + $0x50] sm:$0xff]   ;;  %p758_p13 = scmp.ne.s32.totalorder %s1052_s15, 1 }
  0x5a   : > { %v881_v2 = vld [vmem:[%s1239_s25 + $0xc0] sm:$0xff]   ;;  %766 = vmatprep.subr.bf16.mxu0 %v880_v1  ;;  %v885_v6 = vld [vmem:[%s1239_s25 + $0xc8] sm:$0xff]   ;;  %v889_v10 = vld [vmem:[%s1239_s25 + $0xd0] sm:$0xff]  }
  0x5b   : > { %v882_v3 = vld [vmem:[%s1239_s25] sm:$0xff]   ;;  %788 = vmatprep.subr.bf16.mxu1 %v881_v2  ;;  %v886_v7 = vld [vmem:[%s1239_s25 + $0x8] sm:$0xff]   ;;  %v890_v11 = vld [vmem:[%s1239_s25 + $0x10] sm:$0xff]  }
  0x5c   : > { %v883_v4 = vld [vmem:[%s1239_s25 + $0x80] sm:$0xff]   ;;  %767 = vmatpush3.bf16.msra.mxu0 %v882_v3  ;;  %v887_v8 = vld [vmem:[%s1239_s25 + $0x88] sm:$0xff]   ;;  %v891_v12 = vld [vmem:[%s1239_s25 + $0x90] sm:$0xff]  }
  0x5d   : > { %789 = vmatpush3.bf16.msra.mxu1 %v883_v4  ;;  %768 = vmatprep.subr.bf16.mxu0 %v884_v5  ;;  %v892_v13 = vld [vmem:[%s1239_s25 + $0x58] sm:$0xff]   ;;  %v896_v17 = vld [vmem:[%s1239_s25 + $0x60] sm:$0xff]   ;;  %v900_v21 = vld [vmem:[%s1239_s25 + $0x68] sm:$0xff]  }
  0x5e   : > { %790 = vmatprep.subr.bf16.mxu1 %v885_v6  ;;  %v893_v14 = vld [vmem:[%s1239_s25 + $0xd8] sm:$0xff]   ;;  %v897_v18 = vld [vmem:[%s1239_s25 + $0xe0] sm:$0xff]   ;;  %v901_v22 = vld [vmem:[%s1239_s25 + $0xe8] sm:$0xff]  }
  0x5f   : > { %v894_v15 = vld [vmem:[%s1239_s25 + $0x18] sm:$0xff]   ;;  %v898_v19 = vld [vmem:[%s1239_s25 + $0x20] sm:$0xff]   ;;  %v902_v23 = vld [vmem:[%s1239_s25 + $0x28] sm:$0xff]  }
  0x60   : > { %769 = vmatpush3.bf16.msra.mxu0 %v886_v7  ;;  %v895_v16 = vld [vmem:[%s1239_s25 + $0x98] sm:$0xff]   ;;  %v899_v20 = vld [vmem:[%s1239_s25 + $0xa0] sm:$0xff]   ;;  %v903_v24 = vld [vmem:[%s1239_s25 + $0xa8] sm:$0xff]  }
  0x61   : > { %791 = vmatpush3.bf16.msra.mxu1 %v887_v8  ;;  %770 = vmatprep.subr.bf16.mxu0 %v888_v9  ;;  %v904_v25 = vld [vmem:[%s1239_s25 + $0x70] sm:$0xff]   ;;  %v908_v29 = vld [vmem:[%s1239_s25 + $0x78] sm:$0xff]  }
  0x62   : > { %792 = vmatprep.subr.bf16.mxu1 %v889_v10  ;;  %v905_v26 = vld [vmem:[%s1239_s25 + $0xf0] sm:$0xff]   ;;  %v909_v30 = vld [vmem:[%s1239_s25 + $0xf8] sm:$0xff]  }
  0x63   : > { %v906_v27 = vld [vmem:[%s1239_s25 + $0x30] sm:$0xff]   ;;  %v910_v31 = vld [vmem:[%s1239_s25 + $0x38] sm:$0xff]  }
  0x64   : > { %771 = vmatpush3.bf16.msra.mxu0 %v890_v11  ;;  %v907_v28 = vld [vmem:[%s1239_s25 + $0xb0] sm:$0xff]   ;;  %v911_v32 = vld [vmem:[%s1239_s25 + $0xb8] sm:$0xff]  }
  0x65   : > { %793 = vmatpush3.bf16.msra.mxu1 %v891_v12  ;;  %772 = vmatprep.subr.bf16.mxu0 %v892_v13  ;;  %v245_v33 = vld [vmem:[%s1233_s21] sm:$0xff]  ;;  %v246_v34 = vld [vmem:[%s1233_s21 + $0x8] sm:$0xff] }
  0x66   : > { %794 = vmatprep.subr.bf16.mxu1 %v893_v14  ;;  %v722_v35 = vcombine.low %v245_v33, %v245_v33  ;;  %v723_v36 = vcombine.high %v245_v33, %v245_v33  ;;  %v724_v37 = vcombine.low %v246_v34, %v246_v34  ;;  %v725_v38 = vcombine.high %v246_v34, %v246_v34  ;;  %v244_v47 = vld [vmem:[#allocation2] sm:$0xff] }
  0x67   : > { %v759_v53 = vld [vmem:[%s1332_s2] ss:$0 sm:$0xff] (!%p758_p13) }
  0x68   : > { %773 = vmatpush3.bf16.msra.mxu0 %v894_v15  ;;  %549 = vmatprep.mubr.bf16.mxu0 %v723_v36 }
  0x69   : > { %795 = vmatpush3.bf16.msra.mxu1 %v895_v16  ;;  %774 = vmatprep.subr.bf16.mxu0 %v896_v17 }
  0x6a   : > { %796 = vmatprep.subr.bf16.mxu1 %v897_v18  ;;  %589 = vmatprep.mubr.bf16.mxu1 %v725_v38 }
  0x6c   : > { %775 = vmatpush3.bf16.msra.mxu0 %v898_v19 }
  0x6d   : > { %797 = vmatpush3.bf16.msra.mxu1 %v899_v20  ;;  %776 = vmatprep.subr.bf16.mxu0 %v900_v21 }
  0x6e   : > { %798 = vmatprep.subr.bf16.mxu1 %v901_v22 }
  0x70   : > { %777 = vmatpush3.bf16.msra.mxu0 %v902_v23 }
  0x71   : > { %799 = vmatpush3.bf16.msra.mxu1 %v903_v24  ;;  %778 = vmatprep.subr.bf16.mxu0 %v904_v25 }
  0x72   : > { %800 = vmatprep.subr.bf16.mxu1 %v905_v26 }
  0x74   : > { %779 = vmatpush3.bf16.msra.mxu0 %v906_v27 }
  0x75   : > { %801 = vmatpush3.bf16.msra.mxu1 %v907_v28  ;;  %780 = vmatprep.subr.bf16.mxu0 %v908_v29 }
  0x76   : > { %802 = vmatprep.subr.bf16.mxu1 %v909_v30 }
  0x78   : > { %781 = vmatpush3.bf16.msra.mxu0 %v910_v31 }
  0x79   : > { %803 = vmatpush3.bf16.msra.mxu1 %v911_v32 }
  0x7b   : > { %550 = vmatmul.mubr.bf16.vlgmr.msra.gmra.mrb[0].mxu0 %v722_v35 }
  0x7c   : > { %590 = vmatmul.mubr.bf16.vlgmr.msra.gmra.mrb[0].mxu1 %v724_v37 }
 0x14e   : > { %v782_v39 = vpop.f32.mrb[0].mxu0 }
 0x14f   : > { %v804_v40 = vpop.f32.mrb[0].mxu1  ;;  %v783_v41 = vpop.f32.mrb[1].mxu0 }
 0x150   : > { %v805_v42 = vpop.f32.mrb[1].mxu1  ;;  %v784_v43 = vadd.f32 %v783_v41, %v782_v39  ;;  %v785_v45 = vpop.f32.mrb[2].mxu0 }
 0x151   : > { %v806_v44 = vadd.f32 %v805_v42, %v804_v40  ;;  %v807_v46 = vpop.f32.mrb[2].mxu1  ;;  %v786_v48 = vpop.f32.mrb[3].mxu0  ;;  %602 = sbr.rel (%p758_p13) target bundleno = 354 (0x162), region = 48 }
 0x152   : > { %v808_v49 = vpop.f32.mrb[3].mxu1 }
 0x153   : > { %v592_v50 = vadd.f32 %v806_v44, %v784_v43 }
 0x155   : > { %v597_v51 = vadd.f32 %v592_v50, %v244_v47 }
 0x157   : > { %598 = vst [vmem:[#allocation2] sm:$0xff] %v597_v51 }
 0x15e   : > { %v603_v52 = vld [vmem:[#allocation2] sm:$0xff] }
 0x15f   : > { %v611_v54 = vadd.f32 %v759_v53, %v603_v52 }
 0x161   : > { %612 = vst [vmem:[#allocation8] sm:$0xff] %v611_v54 }
 0x162 PF: > { %p1286_p6 = scmp.eq.s32.totalorder %s709_s18, 1  ;;  %s1067_s12 = smov [#allocation8]  }
 0x163   : > { %s622_s30 = sshll.u32 %s1067_s12, 4  ;;  %s623_s30 = int_to_ptr.vmem [resolvable:$true] %s622_s30 }
 0x164   : > { %s976_s15 = scalar_lea.vmem %s623_s30, 128  ;;  %p983_p1 = scmp.lt.s32.totalorder %s623_s30, %s623_s30 }
 0x165   : > { %p977_p8 = scmp.ne.s32.totalorder %s623_s30, %s976_s15  ;;  %p984_p5 = scmp.lt.s32.totalorder %s976_s15, %s976_s15 }
 0x167   : > { %p978_p3 = pnand %p977_p8, %p1286_p6  ;;  %p985_p10 = por %p984_p5, %p983_p1 }
 0x169   : > { %p979_p4 = pneg %p978_p3 }
 0x16b   : > { %p986_p11 = pnand %p985_p10, %p979_p4 }
 0x16d   : > { %989 = shalt.err (!%p986_p11)
}
 0x16e   : > { %s990_s18 = scalar_lea.hbm %s1333_s3, 128 }
 0x16f   : > { %p991_p12 = scmp.ne.s32.totalorder %s1333_s3, %s990_s18  ;;  %p996_p7 = scmp.lt.u32.totalorder %s990_s18, %s1333_s3 }
 0x171   : > { %p992_p0 = pnand %p991_p12, %p1286_p6 }
 0x173   : > { %p993_p2 = pneg %p992_p0 }
 0x175   : > { %p998_p9 = pnand %p996_p7, %p993_p2 }
 0x177   : > { %1001 = shalt.err (!%p998_p9)
}
 0x178   : > { %815 = dma.vmem_to_hbm [thread:$0]  (%p1286_p6), %s623_s30, 128, %s1333_s3, [#allocation5]  }
 0x179   : > { %1035 = dma.done.wait (%p1286_p6), [#allocation5], 128  }
 0x17a   : > { %1037 = vsyncadd (%p1286_p6), [#allocation5], 4294967168 }
 0x17b PF: > { %s20_s17 = sadd.s32 1, %s1060_s17   ;;  %s1343_s12 = smov %s1044_s13 }
 0x17c   : > { %p17_p13 = scmp.ge.s32.totalorder %s20_s17, 4   ;;  %s1344_s13 = smov %s1048_s14 }
 0x17d   : > { %s1345_s14 = smov %s1139_s24  ;;  %s1346_s15 = smov %s1056_s16 }
 0x17e   : > { %s1347_s16 = smov %s1349_s19  ;;  %19 = sbr.rel (!%p17_p13) target bundleno = 7 (0x7), region = 91 }
 0x185   :  { %635 = vsyncpa [#allocation4], 1 }
 0x186   :  { %637 = vsyncpa [#allocation4 + $0x1], 1 }
 0x187   :  { %638 = vsyncpa [#allocation7], 1 }
 0x188   :  { %640 = vsyncpa [#allocation7 + $0x1], 1 }
 0x189   :  { %641 = vsyncpa [#allocation5], 1 }
 0x18a   :  { %643 = vsyncpa [#allocation5 + $0x1], 1 }

</bundles_post_ra>
